<compile_context>
chip_gen: v7x
topology: tpu7x:2x2x1
jax: 0.10.0
libtpu: 0.0.40
codegen_flags: <defaults>
</compile_context>

<pallas_src>
import functools

import jax
import jax.numpy as jnp
from jax.experimental import pallas as pl
from jax.experimental.pallas import tpu as pltpu


def _round_up(n, m=128):
    return ((n + m - 1) // m) * m


def _lstm_seq_kernel(x_ref, h0_ref, c0_ref, w_ref, b_ref, wo_ref, bo_ref,
                     out_ref, hn_ref, cn_ref):
    # Weights load once, resident in VMEM/vregs for all T steps.
    W = w_ref[...]           # (Ip+Hp, 4*Hp)  [Wih ; Whh], gate order [i, f, g, o]
    b = b_ref[...]           # (1, 4*Hp)      b_ih + b_hh (padded lanes 0)
    Wo = wo_ref[...]         # (Hp, Op)
    bo = bo_ref[...]         # (1, Op)        padded lanes pre-set to -1e30

    T = x_ref.shape[0]
    Hp = h0_ref.shape[-1]

    def step(t, carry):
        h, c = carry
        x = x_ref[pl.ds(t, 1), :]                         # (1, Ip)
        xh = jnp.concatenate([x, h], axis=-1)             # (1, Ip+Hp), lane-aligned
        # Single fused gate matmul on the MXU, f32 accumulate.
        gates = jnp.dot(xh, W, preferred_element_type=jnp.float32) + b
        # Each gate slice is a whole-vreg (128-lane) block — no lane rotates.
        i_g = jax.nn.sigmoid(gates[:, 0 * Hp:1 * Hp])
        f_g = jax.nn.sigmoid(gates[:, 1 * Hp:2 * Hp])
        g_g = jnp.tanh(gates[:, 2 * Hp:3 * Hp])
        o_g = jax.nn.sigmoid(gates[:, 3 * Hp:4 * Hp])
        c_new = f_g * c + i_g * g_g
        h_new = o_g * jnp.tanh(c_new)
        # h2o linear + log-softmax; padded logits are -1e30 -> exp underflows to 0.
        logits = jnp.dot(h_new, Wo, preferred_element_type=jnp.float32) + bo
        m = jnp.max(logits, axis=-1, keepdims=True)
        lse = m + jnp.log(jnp.sum(jnp.exp(logits - m), axis=-1, keepdims=True))
        out_ref[pl.ds(t, 1), :] = logits - lse
        return h_new, c_new

    h_fin, c_fin = jax.lax.fori_loop(0, T, step, (h0_ref[...], c0_ref[...]),
                                     unroll=(T <= 8))
    hn_ref[...] = h_fin
    cn_ref[...] = c_fin


def init_params(key, input_size, hidden_size, output_size):
    ks = jax.random.split(key, 6)
    k_lstm = 1.0 / jnp.sqrt(hidden_size)
    k_lin = 1.0 / jnp.sqrt(hidden_size)
    u = lambda k, shape, s: jax.random.uniform(k, shape, jnp.float32, -s, s)
    return {
        "w_ih": u(ks[0], (4 * hidden_size, input_size), k_lstm),
        "w_hh": u(ks[1], (4 * hidden_size, hidden_size), k_lstm),
        "b_ih": u(ks[2], (4 * hidden_size,), k_lstm),
        "b_hh": u(ks[3], (4 * hidden_size,), k_lstm),
        "w_ho": u(ks[4], (output_size, hidden_size), k_lin),
        "b_ho": u(ks[5], (output_size,), k_lin),
    }


def prepare_params(params):
    """One-time packing: transpose, sum biases, concat [Wih;Whh], pad lane-dense to 128.
    Hoisted out of the per-step path entirely."""
    w_ih = params["w_ih"].astype(jnp.float32)    # (4H, I), gate order [i, f, g, o]
    w_hh = params["w_hh"].astype(jnp.float32)    # (4H, H)
    bias = (params["b_ih"] + params["b_hh"]).astype(jnp.float32)   # (4H,)
    w_ho = params["w_ho"].astype(jnp.float32)    # (O, H)
    b_ho = params["b_ho"].astype(jnp.float32)    # (O,)

    I = w_ih.shape[1]
    H = w_hh.shape[1]
    O = w_ho.shape[0]
    Ip, Hp, Op = _round_up(I), _round_up(H), _round_up(O)

    wih_t = w_ih.T    # (I, 4H)
    whh_t = w_hh.T    # (H, 4H)

    # Combined, padded gate slab: zero padding keeps padded h/c lanes exactly 0
    # through the recurrence (sigmoid(0)=0.5, tanh(0)=0 => c_pad stays 0, h_pad = 0).
    W = jnp.zeros((Ip + Hp, 4 * Hp), jnp.float32)
    bg = jnp.zeros((1, 4 * Hp), jnp.float32)
    for k in range(4):
        W = W.at[:I, k * Hp:k * Hp + H].set(wih_t[:, k * H:(k + 1) * H])
        W = W.at[Ip:Ip + H, k * Hp:k * Hp + H].set(whh_t[:, k * H:(k + 1) * H])
        bg = bg.at[0, k * Hp:k * Hp + H].set(bias[k * H:(k + 1) * H])

    Wo = jnp.zeros((Hp, Op), jnp.float32).at[:H, :O].set(w_ho.T)
    # Padded output lanes get -1e30 so the in-kernel log-softmax ignores them.
    bo = jnp.full((1, Op), -1e30, jnp.float32).at[0, :O].set(b_ho)

    weights = {"W": W, "b": bg, "Wo": Wo, "bo": bo}
    sizes = (I, H, O, Ip, Hp, Op)
    return weights, sizes


@functools.partial(jax.jit, static_argnums=(4,))
def _lstm_seq_call(x_seq, h0, c0, weights, sizes):
    I, H, O, Ip, Hp, Op = sizes
    T = x_seq.shape[0]
    xp = jnp.zeros((T, Ip), jnp.float32).at[:, :I].set(x_seq.astype(jnp.float32))
    hp = jnp.zeros((1, Hp), jnp.float32).at[:, :H].set(h0.astype(jnp.float32))
    cp = jnp.zeros((1, Hp), jnp.float32).at[:, :H].set(c0.astype(jnp.float32))

    vmem = pl.BlockSpec(memory_space=pltpu.MemorySpace.VMEM)
    out, hn, cn = pl.pallas_call(
        _lstm_seq_kernel,
        out_shape=(jax.ShapeDtypeStruct((T, Op), jnp.float32),
                   jax.ShapeDtypeStruct((1, Hp), jnp.float32),
                   jax.ShapeDtypeStruct((1, Hp), jnp.float32)),
        in_specs=[vmem] * 7,
        out_specs=(vmem, vmem, vmem),
        # Explicit VMEM budget (fits every generation; weights slab is ~0.7 MiB).
        compiler_params=pltpu.CompilerParams(vmem_limit_bytes=32 * 1024 * 1024),
    )(xp, hp, cp, weights["W"], weights["b"], weights["Wo"], weights["bo"])

    return out[:, :O], hn[:, :H], cn[:, :H]


def lstm_forward(x, hidden, prepared):
    """Exact semantics of the PyTorch module's forward(): one timestep.
    Returns (log_softmax (1, O), (h1 (1,1,H), c1 (1,1,H)))."""
    weights, sizes = prepared
    I, H, O = sizes[:3]
    h0, c0 = hidden
    out, hn, cn = _lstm_seq_call(x.reshape(1, I), h0.reshape(1, H),
                                 c0.reshape(1, H), weights, sizes)
    return out.reshape(1, O), (hn.reshape(1, 1, H), cn.reshape(1, 1, H))


def lstm_forward_seq(x_seq, hidden, prepared):
    """Equivalent to calling the module's forward() T times, but fused into ONE
    pallas_call (weights resident, state carried in-kernel)."""
    weights, sizes = prepared
    I, H, O = sizes[:3]
    h0, c0 = hidden
    T = x_seq.shape[0]
    out, hn, cn = _lstm_seq_call(x_seq.reshape(T, I), h0.reshape(1, H),
                                 c0.reshape(1, H), weights, sizes)
    return out, (hn.reshape(1, 1, H), cn.reshape(1, 1, H))


def _reference_step(x, h, c, params):
    """Pure-JAX reference for one step (same math as PyTorch nn.LSTM + Linear + LogSoftmax)."""
    H = params["w_hh"].shape[1]
    x2 = x.reshape(1, -1)
    gates = (x2 @ params["w_ih"].T + h @ params["w_hh"].T
             + params["b_ih"] + params["b_hh"])
    i_g = jax.nn.sigmoid(gates[:, 0 * H:1 * H])
    f_g = jax.nn.sigmoid(gates[:, 1 * H:2 * H])
    g_g = jnp.tanh(gates[:, 2 * H:3 * H])
    o_g = jax.nn.sigmoid(gates[:, 3 * H:4 * H])
    c_new = f_g * c + i_g * g_g
    h_new = o_g * jnp.tanh(c_new)
    logits = h_new @ params["w_ho"].T + params["b_ho"]
    out = jax.nn.log_softmax(logits, axis=-1)
    return out, h_new, c_new


if __name__ == "__main__":
    input_size, hidden_size, output_size, seq_len = 16, 32, 8, 8

    key = jax.random.PRNGKey(0)
    k_p, k_x = jax.random.split(key)
    params = init_params(k_p, input_size, hidden_size, output_size)
    prepared = prepare_params(params)   # one-time packing (hoisted out of per-step path)

    x_seq = jax.random.normal(k_x, (seq_len, input_size), jnp.float32)
    h0 = jnp.zeros((1, 1, hidden_size), jnp.float32)
    c0 = jnp.zeros((1, 1, hidden_size), jnp.float32)

    # --- single-step forward (module semantics) ---
    out, (h1, c1) = lstm_forward(x_seq[0], (h0, c0), prepared)
    jax.block_until_ready((out, h1, c1))
    r_out, r_h, r_c = _reference_step(x_seq[0], h0.reshape(1, -1), c0.reshape(1, -1), params)
    assert out.shape == (1, output_size)
    assert h1.shape == (1, 1, hidden_size) and c1.shape == (1, 1, hidden_size)
    assert jnp.allclose(out, r_out, atol=1e-4), "single-step log-softmax mismatch"
    assert jnp.allclose(h1.reshape(1, -1), r_h, atol=1e-4), "single-step h mismatch"
    assert jnp.allclose(c1.reshape(1, -1), r_c, atol=1e-4), "single-step c mismatch"

    # --- fused sequence: seq_len steps in one kernel launch ---
    out_seq, (hT, cT) = lstm_forward_seq(x_seq, (h0, c0), prepared)
    jax.block_until_ready((out_seq, hT, cT))
    h, c = h0.reshape(1, -1), c0.reshape(1, -1)
    ref_outs = []
    for t in range(seq_len):
        o, h, c = _reference_step(x_seq[t], h, c, params)
        ref_outs.append(o)
    ref_seq = jnp.concatenate(ref_outs, axis=0)
    assert out_seq.shape == (seq_len, output_size)
    assert jnp.allclose(out_seq, ref_seq, atol=1e-4), "fused-seq output mismatch"
    assert jnp.allclose(hT.reshape(1, -1), h, atol=1e-4), "fused-seq h mismatch"
    assert jnp.allclose(cT.reshape(1, -1), c, atol=1e-4), "fused-seq c mismatch"

    print("KERNEL_OK")
</pallas_src>

<mosaic_0001>
module attributes {stable_mosaic.version = 11 : i64} {
  func.func @_lstm_seq_kernel(%arg0: memref<1x128xf32, #tpu.memory_space<vmem>>, %arg1: memref<1x128xf32, #tpu.memory_space<vmem>>, %arg2: memref<1x128xf32, #tpu.memory_space<vmem>>, %arg3: memref<256x512xf32, #tpu.memory_space<vmem>>, %arg4: memref<1x512xf32, #tpu.memory_space<vmem>>, %arg5: memref<128x128xf32, #tpu.memory_space<vmem>>, %arg6: memref<1x128xf32, #tpu.memory_space<vmem>>, %arg7: memref<1x128xf32, #tpu.memory_space<vmem>>, %arg8: memref<1x128xf32, #tpu.memory_space<vmem>>, %arg9: memref<1x128xf32, #tpu.memory_space<vmem>>) attributes {dimension_semantics = [], scalar_prefetch = 0 : i64, scratch_operands = 0 : i64, tpu.core_type = #tpu.core_type<tc>} {
    %c0 = arith.constant 0 : index
    %c0_0 = arith.constant 0 : index
    %0 = vector.load %arg3[%c0, %c0_0] : memref<256x512xf32, #tpu.memory_space<vmem>>, vector<256x512xf32>
    %c0_1 = arith.constant 0 : index
    %c0_2 = arith.constant 0 : index
    %1 = vector.load %arg4[%c0_1, %c0_2] : memref<1x512xf32, #tpu.memory_space<vmem>>, vector<1x512xf32>
    %c0_3 = arith.constant 0 : index
    %c0_4 = arith.constant 0 : index
    %2 = vector.load %arg5[%c0_3, %c0_4] : memref<128x128xf32, #tpu.memory_space<vmem>>, vector<128x128xf32>
    %c0_5 = arith.constant 0 : index
    %c0_6 = arith.constant 0 : index
    %3 = vector.load %arg6[%c0_5, %c0_6] : memref<1x128xf32, #tpu.memory_space<vmem>>, vector<1x128xf32>
    %c0_7 = arith.constant 0 : index
    %c0_8 = arith.constant 0 : index
    %4 = vector.load %arg1[%c0_7, %c0_8] : memref<1x128xf32, #tpu.memory_space<vmem>>, vector<1x128xf32>
    %c0_9 = arith.constant 0 : index
    %c0_10 = arith.constant 0 : index
    %5 = vector.load %arg2[%c0_9, %c0_10] : memref<1x128xf32, #tpu.memory_space<vmem>>, vector<1x128xf32>
    %c0_i32 = arith.constant 0 : i32
    %6 = arith.index_cast %c0_i32 : i32 to index
    %c0_11 = arith.constant 0 : index
    %7 = vector.load %arg0[%6, %c0_11] : memref<1x128xf32, #tpu.memory_space<vmem>>, vector<1x128xf32>
    %8 = tpu.concatenate %7, %4 in 1 : vector<1x128xf32>, vector<1x128xf32> -> vector<1x256xf32>
    %cst = arith.constant dense<0.000000e+00> : vector<1x512xf32>
    %9 = tpu.matmul %8, %0, %cst {dimension_numbers = #tpu.dot_dimension_numbers<[1], [0], [0], [1], [0, 0, 1, 1], [], []>} : vector<1x256xf32>, vector<256x512xf32>, vector<1x512xf32> -> vector<1x512xf32>
    %10 = arith.addf %9, %1 : vector<1x512xf32>
    %11 = vector.extract_strided_slice %10 {offsets = [0, 0], sizes = [1, 128], strides = [1, 1]} : vector<1x512xf32> to vector<1x128xf32>
    %12 = arith.negf %11 : vector<1x128xf32>
    %13 = math.exp %12 : vector<1x128xf32>
    %cst_12 = arith.constant 1.000000e+00 : f32
    %14 = vector.broadcast %cst_12 : f32 to vector<1x128xf32>
    %15 = arith.addf %14, %13 : vector<1x128xf32>
    %16 = arith.divf %14, %15 : vector<1x128xf32>
    %17 = vector.extract_strided_slice %10 {offsets = [0, 128], sizes = [1, 128], strides = [1, 1]} : vector<1x512xf32> to vector<1x128xf32>
    %18 = arith.negf %17 : vector<1x128xf32>
    %19 = math.exp %18 : vector<1x128xf32>
    %cst_13 = arith.constant 1.000000e+00 : f32
    %20 = vector.broadcast %cst_13 : f32 to vector<1x128xf32>
    %21 = arith.addf %20, %19 : vector<1x128xf32>
    %22 = arith.divf %20, %21 : vector<1x128xf32>
    %23 = vector.extract_strided_slice %10 {offsets = [0, 256], sizes = [1, 128], strides = [1, 1]} : vector<1x512xf32> to vector<1x128xf32>
    %24 = math.tanh %23 : vector<1x128xf32>
    %25 = vector.extract_strided_slice %10 {offsets = [0, 384], sizes = [1, 128], strides = [1, 1]} : vector<1x512xf32> to vector<1x128xf32>
    %26 = arith.negf %25 : vector<1x128xf32>
    %27 = math.exp %26 : vector<1x128xf32>
    %cst_14 = arith.constant 1.000000e+00 : f32
    %28 = vector.broadcast %cst_14 : f32 to vector<1x128xf32>
    %29 = arith.addf %28, %27 : vector<1x128xf32>
    %30 = arith.divf %28, %29 : vector<1x128xf32>
    %31 = arith.mulf %22, %5 : vector<1x128xf32>
    %32 = arith.mulf %16, %24 : vector<1x128xf32>
    %33 = arith.addf %31, %32 : vector<1x128xf32>
    %34 = math.tanh %33 : vector<1x128xf32>
    %35 = arith.mulf %30, %34 : vector<1x128xf32>
    %cst_15 = arith.constant dense<0.000000e+00> : vector<1x128xf32>
    %36 = tpu.matmul %35, %2, %cst_15 {dimension_numbers = #tpu.dot_dimension_numbers<[1], [0], [0], [1], [0, 0, 1, 1], [], []>} : vector<1x128xf32>, vector<128x128xf32>, vector<1x128xf32> -> vector<1x128xf32>
    %37 = arith.addf %36, %3 : vector<1x128xf32>
    %cst_16 = arith.constant dense<0xFF800000> : vector<1xf32>
    %38 = vector.multi_reduction <maximumf>, %37, %cst_16 [1] : vector<1x128xf32> to vector<1xf32>
    %39 = vector.shape_cast %38 : vector<1xf32> to vector<1x1xf32>
    %40 = vector.broadcast %39 : vector<1x1xf32> to vector<1x128xf32>
    %41 = arith.subf %37, %40 : vector<1x128xf32>
    %42 = math.exp %41 : vector<1x128xf32>
    %cst_17 = arith.constant dense<0.000000e+00> : vector<1xf32>
    %43 = vector.multi_reduction <add>, %42, %cst_17 [1] : vector<1x128xf32> to vector<1xf32>
    %44 = vector.shape_cast %43 : vector<1xf32> to vector<1x1xf32>
    %45 = math.log %44 : vector<1x1xf32>
    %46 = arith.addf %39, %45 : vector<1x1xf32>
    %47 = vector.broadcast %46 : vector<1x1xf32> to vector<1x128xf32>
    %48 = arith.subf %37, %47 : vector<1x128xf32>
    %49 = arith.index_cast %c0_i32 : i32 to index
    %c0_18 = arith.constant 0 : index
    %50 = vector.load %arg7[%49, %c0_18] : memref<1x128xf32, #tpu.memory_space<vmem>>, vector<1x128xf32>
    tpu.vector_store %arg7[%49, %c0_18], %48 {strides = array<i32>} : memref<1x128xf32, #tpu.memory_space<vmem>>, vector<1x128xf32>,
    %c1_i32 = arith.constant 1 : i32
    %c0_19 = arith.constant 0 : index
    %c0_20 = arith.constant 0 : index
    %51 = vector.load %arg8[%c0_19, %c0_20] : memref<1x128xf32, #tpu.memory_space<vmem>>, vector<1x128xf32>
    tpu.vector_store %arg8[%c0_19, %c0_20], %35 {strides = array<i32>} : memref<1x128xf32, #tpu.memory_space<vmem>>, vector<1x128xf32>,
    %c0_21 = arith.constant 0 : index
    %c0_22 = arith.constant 0 : index
    %52 = vector.load %arg9[%c0_21, %c0_22] : memref<1x128xf32, #tpu.memory_space<vmem>>, vector<1x128xf32>
    tpu.vector_store %arg9[%c0_21, %c0_22], %33 {strides = array<i32>} : memref<1x128xf32, #tpu.memory_space<vmem>>, vector<1x128xf32>,
    return
  }
}

</mosaic_0001>

<bundles_post_ra>
// kernel: _lstm_seq_call.1
= control target key start
LH: loop header
LB: loop body
LE: loop exit
PB: predicated region body
PF: predicated region fallthrough
CT: control target
= control target key end

     0   :  { %15 = vsyncpa [#allocation3], 0  ;;  %s1019_s0 = inlined_call_operand.vmem [shape: f32[1,128], index: 0, kind: input, shape index: {}]   ;;  %s1020_s1 = inlined_call_operand.vmem [shape: f32[1,128], index: 1, kind: input, shape index: {}]   ;;  %s1021_s2 = inlined_call_operand.vmem [shape: f32[1,128], index: 2, kind: input, shape index: {}]   ;;  %s1022_s3 = inlined_call_operand.hbm [shape: f32[256,512], index: 3, kind: input, shape index: {}]   ;;  %s1023_s4 = inlined_call_operand.vmem [shape: f32[1,512], index: 4, kind: input, shape index: {}]   ;;  %s1024_s5 = inlined_call_operand.hbm [shape: f32[128,128], index: 5, kind: input, shape index: {}]   ;;  %s1025_s6 = inlined_call_operand.vmem [shape: f32[1,128], index: 6, kind: input, shape index: {}]   ;;  %s1026_s7 = inlined_call_operand.hbm [shape: f32[1,128], index: 7, kind: output, shape index: {0}]   ;;  %s1027_s8 = inlined_call_operand.hbm [shape: f32[1,128], index: 8, kind: output, shape index: {1}]   ;;  %s1028_s9 = inlined_call_operand.hbm [shape: f32[1,128], index: 9, kind: output, shape index: {2}]  }
   0x1   :  { %16 = vsyncpa [#allocation6], 0 }
   0x2   :  { %17 = vsyncpa [#allocation4], 0 }
   0x3   :  { %18 = vsyncpa [#allocation9], 0  ;;  %s882_s30 = smov [#allocation2]   ;;  %s764_s13 = scalar_lea.hbm %s1022_s3, 16384 }
   0x4   :  { %s30_s10 = sshll.u32 %s882_s30, 4  ;;  %p765_p0 = scmp.ne.s32.totalorder %s1022_s3, %s764_s13  ;;  %s31_s10 = int_to_ptr.vmem [resolvable:$true] %s30_s10 }
   0x5   :  { %p768_p1 = scmp.lt.u32.totalorder %s764_s13, %s1022_s3 }
   0x7   :  { %p770_p2 = pnand %p768_p1, %p765_p0 }
   0x9   :  { %773 = shalt.err (!%p770_p2)
}
   0xa   :  { %s774_s18 = scalar_lea.vmem %s31_s10, 16384  ;;  %p779_p4 = scmp.lt.s32.totalorder %s31_s10, %s31_s10 }
   0xb   :  { %p775_p3 = scmp.ne.s32.totalorder %s31_s10, %s774_s18  ;;  %p780_p5 = scmp.lt.s32.totalorder %s774_s18, %s774_s18 }
   0xd   :  { %p781_p6 = por %p780_p5, %p779_p4 }
   0xf   :  { %p782_p7 = pnand %p781_p6, %p775_p3 }
  0x11   :  { %785 = shalt.err (!%p782_p7)
}
  0x12   :  { %s883_s19 = smov 512   ;;  %s884_s20 = smov 32  }
  0x13   :  { %36 = dma.hbm_to_vmem [thread:$0]  %s1022_s3, 16384, %s31_s10, [#allocation3], %s883_s19, %s883_s19, %s884_s20  }
  0x14   :  { %s885_s23 = smov [#allocation5]   ;;  %s786_s27 = scalar_lea.hbm %s1024_s5, 2048 }
  0x15   :  { %s44_s24 = sshll.u32 %s885_s23, 4  ;;  %p787_p8 = scmp.ne.s32.totalorder %s1024_s5, %s786_s27  ;;  %s45_s24 = int_to_ptr.vmem [resolvable:$true] %s44_s24 }
  0x16   :  { %p790_p9 = scmp.lt.u32.totalorder %s786_s27, %s1024_s5 }
  0x18   :  { %p792_p10 = pnand %p790_p9, %p787_p8 }
  0x1a   :  { %795 = shalt.err (!%p792_p10)
}
  0x1b   :  { %s796_s12 = scalar_lea.vmem %s45_s24, 2048  ;;  %p801_p12 = scmp.lt.s32.totalorder %s45_s24, %s45_s24 }
  0x1c   :  { %p797_p11 = scmp.ne.s32.totalorder %s45_s24, %s796_s12  ;;  %p802_p13 = scmp.lt.s32.totalorder %s796_s12, %s796_s12 }
  0x1e   :  { %p803_p0 = por %p802_p13, %p801_p12 }
  0x20   :  { %p804_p1 = pnand %p803_p0, %p797_p11 }
  0x22   :  { %807 = shalt.err (!%p804_p1)
}
  0x23   :  { %s886_s3 = smov 128   ;;  %s887_s10 = smov 8  }
  0x24   :  { %50 = dma.hbm_to_vmem [thread:$0]  %s1024_s5, 2048, %s45_s24, [#allocation6], %s886_s3, %s886_s3, %s887_s10  }
  0x25   :  { %874 = dma.done.wait [#allocation3], 16384  }
  0x26   :  { %875 = vsyncadd [#allocation3], 4294950912 }
  0x27   :  { %876 = dma.done.wait [#allocation6], 2048  }
  0x28   :  { %877 = vsyncadd [#allocation6], 4294965248  ;;  %v60_v0 = vld [vmem:[#allocation2 + $0x8] sm:$0xff]  ;;  %v59_v2 = vld [vmem:[#allocation2] sm:$0xff]  ;;  %vm889_vm0 = vmmov 0   ;;  %vm465_vm1 = vcmask 1040384  }
  0x29   :  { %v64_v1 = vld [vmem:[#allocation2 + $0x28] sm:$0xff]  ;;  %v63_v4 = vld [vmem:[#allocation2 + $0x20] sm:$0xff]  ;;  %v62_v18 = vld [vmem:[#allocation2 + $0x18] sm:$0xff] }
  0x2a   :  { %v580_v3 = vpack.c.bf16 %v64_v1, %v60_v0  ;;  %v68_v5 = vld [vmem:[#allocation2 + $0x48] sm:$0xff]  ;;  %v582_v7 = vpack.c.bf16 %v63_v4, %v59_v2  ;;  %v67_v9 = vld [vmem:[#allocation2 + $0x40] sm:$0xff]  ;;  %v66_v19 = vld [vmem:[#allocation2 + $0x38] sm:$0xff] }
  0x2b   :  { %v72_v6 = vld [vmem:[#allocation2 + $0x68] sm:$0xff]  ;;  %v71_v10 = vld [vmem:[#allocation2 + $0x60] sm:$0xff]  ;;  %v644_v21 = vpack.c.bf16 %v66_v19, %v62_v18  ;;  %v61_v22 = vld [vmem:[#allocation2 + $0x10] sm:$0xff] }
  0x2c   :  { %v584_v8 = vpack.c.bf16 %v72_v6, %v68_v5  ;;  %v76_v11 = vld [vmem:[#allocation2 + $0x88] sm:$0xff]  ;;  %581 = vmatprep.subr.bf16.mxu0 %v580_v3  ;;  %v586_v13 = vpack.c.bf16 %v71_v10, %v67_v9  ;;  %v75_v14 = vld [vmem:[#allocation2 + $0x80] sm:$0xff]  ;;  %v65_v23 = vld [vmem:[#allocation2 + $0x30] sm:$0xff] }
  0x2d   :  { %v80_v12 = vld [vmem:[#allocation2 + $0xa8] sm:$0xff]  ;;  %583 = vmatpush1.bf16.msra.mxu0 %v582_v7  ;;  %v79_v15 = vld [vmem:[#allocation2 + $0xa0] sm:$0xff]  ;;  %v646_v24 = vpack.c.bf16 %v65_v23, %v61_v22  ;;  %645 = vmatprep.subr.bf16.mxu1 %v644_v21  ;;  %v70_v26 = vld [vmem:[#allocation2 + $0x58] sm:$0xff] }
  0x2e   :  { %585 = vmatprep.subr.bf16.mxu0 %v584_v8  ;;  %v588_v16 = vpack.c.bf16 %v80_v12, %v76_v11  ;;  %v84_v17 = vld [vmem:[#allocation2 + $0xc8] sm:$0xff]  ;;  %v590_v25 = vpack.c.bf16 %v79_v15, %v75_v14  ;;  %v74_v27 = vld [vmem:[#allocation2 + $0x78] sm:$0xff]  ;;  %v69_v28 = vld [vmem:[#allocation2 + $0x50] sm:$0xff] }
  0x2f   :  { %v88_v20 = vld [vmem:[#allocation2 + $0xe8] sm:$0xff]  ;;  %v83_v30 = vld [vmem:[#allocation2 + $0xc0] sm:$0xff]  ;;  %647 = vmatpush1.bf16.msra.mxu1 %v646_v24  ;;  %v648_v32 = vpack.c.bf16 %v74_v27, %v70_v26  ;;  %v73_v33 = vld [vmem:[#allocation2 + $0x70] sm:$0xff] }
  0x30   :  { %v592_v29 = vpack.c.bf16 %v88_v20, %v84_v17  ;;  %v87_v31 = vld [vmem:[#allocation2 + $0xe0] sm:$0xff]  ;;  %v92_v34 = vld [vmem:[#allocation2 + $0x108] sm:$0xff]  ;;  %v650_v36 = vpack.c.bf16 %v73_v33, %v69_v28  ;;  %v78_v37 = vld [vmem:[#allocation2 + $0x98] sm:$0xff] }
  0x31   :  { %587 = vmatpush1.bf16.msra.mxu0 %v586_v13  ;;  %v96_v35 = vld [vmem:[#allocation2 + $0x128] sm:$0xff]  ;;  %649 = vmatprep.subr.bf16.mxu1 %v648_v32  ;;  %v82_v38 = vld [vmem:[#allocation2 + $0xb8] sm:$0xff]  ;;  %v77_v39 = vld [vmem:[#allocation2 + $0x90] sm:$0xff]  ;;  %v594_v41 = vpack.c.bf16 %v87_v31, %v83_v30 }
  0x32   :  { %589 = vmatprep.subr.bf16.mxu0 %v588_v16  ;;  %v81_v40 = vld [vmem:[#allocation2 + $0xb0] sm:$0xff]  ;;  %v91_v42 = vld [vmem:[#allocation2 + $0x100] sm:$0xff]  ;;  %v652_v44 = vpack.c.bf16 %v82_v38, %v78_v37  ;;  %v596_v45 = vpack.c.bf16 %v96_v35, %v92_v34  ;;  %v100_v46 = vld [vmem:[#allocation2 + $0x148] sm:$0xff] }
  0x33   :  { %v95_v43 = vld [vmem:[#allocation2 + $0x120] sm:$0xff]  ;;  %651 = vmatpush1.bf16.msra.mxu1 %v650_v36  ;;  %v654_v47 = vpack.c.bf16 %v81_v40, %v77_v39  ;;  %v86_v48 = vld [vmem:[#allocation2 + $0xd8] sm:$0xff]  ;;  %v104_v50 = vld [vmem:[#allocation2 + $0x168] sm:$0xff] }
  0x34   :  { %v90_v49 = vld [vmem:[#allocation2 + $0xf8] sm:$0xff]  ;;  %653 = vmatprep.subr.bf16.mxu1 %v652_v44  ;;  %v85_v52 = vld [vmem:[#allocation2 + $0xd0] sm:$0xff]  ;;  %v598_v54 = vpack.c.bf16 %v95_v43, %v91_v42  ;;  %v600_v57 = vpack.c.bf16 %v104_v50, %v100_v46  ;;  %v99_v58 = vld [vmem:[#allocation2 + $0x140] sm:$0xff] }
  0x35   :  { %591 = vmatpush1.bf16.msra.mxu0 %v590_v25  ;;  %v656_v51 = vpack.c.bf16 %v90_v49, %v86_v48  ;;  %v89_v53 = vld [vmem:[#allocation2 + $0xf0] sm:$0xff]  ;;  %v94_v55 = vld [vmem:[#allocation2 + $0x118] sm:$0xff]  ;;  %v103_v59 = vld [vmem:[#allocation2 + $0x160] sm:$0xff] }
  0x36   :  { %593 = vmatprep.subr.bf16.mxu0 %v592_v29  ;;  %v98_v56 = vld [vmem:[#allocation2 + $0x138] sm:$0xff]  ;;  %v108_v60 = vld [vmem:[#allocation2 + $0x188] sm:$0xff]  ;;  %v658_v61 = vpack.c.bf16 %v89_v53, %v85_v52  ;;  %v93_v0 = vld [vmem:[#allocation2 + $0x110] sm:$0xff]  ;;  %v602_v4 = vpack.c.bf16 %v103_v59, %v99_v58 }
  0x37   :  { %655 = vmatpush1.bf16.msra.mxu1 %v654_v47  ;;  %v112_v62 = vld [vmem:[#allocation2 + $0x1a8] sm:$0xff]  ;;  %v660_v63 = vpack.c.bf16 %v98_v56, %v94_v55  ;;  %v97_v1 = vld [vmem:[#allocation2 + $0x130] sm:$0xff]  ;;  %v102_v2 = vld [vmem:[#allocation2 + $0x158] sm:$0xff] }
  0x38   :  { %657 = vmatprep.subr.bf16.mxu1 %v656_v51  ;;  %v106_v3 = vld [vmem:[#allocation2 + $0x178] sm:$0xff]  ;;  %v604_v5 = vpack.c.bf16 %v112_v62, %v108_v60  ;;  %v107_v6 = vld [vmem:[#allocation2 + $0x180] sm:$0xff]  ;;  %v116_v8 = vld [vmem:[#allocation2 + $0x1c8] sm:$0xff]  ;;  %v662_v9 = vpack.c.bf16 %v97_v1, %v93_v0 }
  0x39   :  { %595 = vmatpush1.bf16.msra.mxu0 %v594_v41  ;;  %v111_v7 = vld [vmem:[#allocation2 + $0x1a0] sm:$0xff]  ;;  %v120_v10 = vld [vmem:[#allocation2 + $0x1e8] sm:$0xff]  ;;  %v664_v11 = vpack.c.bf16 %v106_v3, %v102_v2  ;;  %v101_v12 = vld [vmem:[#allocation2 + $0x150] sm:$0xff] }
  0x3a   :  { %597 = vmatprep.subr.bf16.mxu0 %v596_v45  ;;  %v105_v13 = vld [vmem:[#allocation2 + $0x170] sm:$0xff]  ;;  %v110_v14 = vld [vmem:[#allocation2 + $0x198] sm:$0xff]  ;;  %v606_v16 = vpack.c.bf16 %v111_v7, %v107_v6  ;;  %v608_v17 = vpack.c.bf16 %v120_v10, %v116_v8  ;;  %v115_v18 = vld [vmem:[#allocation2 + $0x1c0] sm:$0xff] }
  0x3b   :  { %659 = vmatpush1.bf16.msra.mxu1 %v658_v61  ;;  %v114_v15 = vld [vmem:[#allocation2 + $0x1b8] sm:$0xff]  ;;  %v119_v19 = vld [vmem:[#allocation2 + $0x1e0] sm:$0xff]  ;;  %v124_v20 = vld [vmem:[#allocation2 + $0x208] sm:$0xff]  ;;  %v666_v21 = vpack.c.bf16 %v105_v13, %v101_v12 }
  0x3c   :  { %661 = vmatprep.subr.bf16.mxu1 %v660_v63  ;;  %v128_v22 = vld [vmem:[#allocation2 + $0x228] sm:$0xff]  ;;  %v668_v23 = vpack.c.bf16 %v114_v15, %v110_v14  ;;  %v109_v24 = vld [vmem:[#allocation2 + $0x190] sm:$0xff]  ;;  %v118_v26 = vld [vmem:[#allocation2 + $0x1d8] sm:$0xff]  ;;  %v610_v28 = vpack.c.bf16 %v119_v19, %v115_v18 }
  0x3d   :  { %599 = vmatpush1.bf16.msra.mxu0 %v598_v54  ;;  %v113_v25 = vld [vmem:[#allocation2 + $0x1b0] sm:$0xff]  ;;  %v122_v27 = vld [vmem:[#allocation2 + $0x1f8] sm:$0xff]  ;;  %v612_v29 = vpack.c.bf16 %v128_v22, %v124_v20  ;;  %v123_v30 = vld [vmem:[#allocation2 + $0x200] sm:$0xff] }
  0x3e   :  { %601 = vmatprep.subr.bf16.mxu0 %v600_v57  ;;  %v127_v31 = vld [vmem:[#allocation2 + $0x220] sm:$0xff]  ;;  %v132_v32 = vld [vmem:[#allocation2 + $0x248] sm:$0xff]  ;;  %v670_v33 = vpack.c.bf16 %v113_v25, %v109_v24  ;;  %v672_v35 = vpack.c.bf16 %v122_v27, %v118_v26  ;;  %v117_v36 = vld [vmem:[#allocation2 + $0x1d0] sm:$0xff] }
  0x3f   :  { %663 = vmatpush1.bf16.msra.mxu1 %v662_v9  ;;  %v136_v34 = vld [vmem:[#allocation2 + $0x268] sm:$0xff]  ;;  %v121_v37 = vld [vmem:[#allocation2 + $0x1f0] sm:$0xff]  ;;  %v126_v38 = vld [vmem:[#allocation2 + $0x218] sm:$0xff]  ;;  %v614_v40 = vpack.c.bf16 %v127_v31, %v123_v30 }
  0x40   :  { %665 = vmatprep.subr.bf16.mxu1 %v664_v11  ;;  %v130_v39 = vld [vmem:[#allocation2 + $0x238] sm:$0xff]  ;;  %v616_v41 = vpack.c.bf16 %v136_v34, %v132_v32  ;;  %v131_v42 = vld [vmem:[#allocation2 + $0x240] sm:$0xff]  ;;  %v140_v44 = vld [vmem:[#allocation2 + $0x288] sm:$0xff]  ;;  %v674_v45 = vpack.c.bf16 %v121_v37, %v117_v36 }
  0x41   :  { %603 = vmatpush1.bf16.msra.mxu0 %v602_v4  ;;  %v135_v43 = vld [vmem:[#allocation2 + $0x260] sm:$0xff]  ;;  %v144_v46 = vld [vmem:[#allocation2 + $0x2a8] sm:$0xff]  ;;  %v676_v47 = vpack.c.bf16 %v130_v39, %v126_v38  ;;  %v125_v48 = vld [vmem:[#allocation2 + $0x210] sm:$0xff] }
  0x42   :  { %605 = vmatprep.subr.bf16.mxu0 %v604_v5  ;;  %v129_v49 = vld [vmem:[#allocation2 + $0x230] sm:$0xff]  ;;  %v134_v50 = vld [vmem:[#allocation2 + $0x258] sm:$0xff]  ;;  %v618_v52 = vpack.c.bf16 %v135_v43, %v131_v42  ;;  %v139_v53 = vld [vmem:[#allocation2 + $0x280] sm:$0xff]  ;;  %v620_v54 = vpack.c.bf16 %v144_v46, %v140_v44 }
  0x43   :  { %667 = vmatpush1.bf16.msra.mxu1 %v666_v21  ;;  %v138_v51 = vld [vmem:[#allocation2 + $0x278] sm:$0xff]  ;;  %v143_v55 = vld [vmem:[#allocation2 + $0x2a0] sm:$0xff]  ;;  %v148_v56 = vld [vmem:[#allocation2 + $0x2c8] sm:$0xff]  ;;  %v678_v58 = vpack.c.bf16 %v129_v49, %v125_v48 }
  0x44   :  { %669 = vmatprep.subr.bf16.mxu1 %v668_v23  ;;  %v152_v57 = vld [vmem:[#allocation2 + $0x2e8] sm:$0xff]  ;;  %v680_v59 = vpack.c.bf16 %v138_v51, %v134_v50  ;;  %v133_v60 = vld [vmem:[#allocation2 + $0x250] sm:$0xff]  ;;  %v205_v62 = vld [vmem:[%s1020_s1] sm:$0x1]  ;;  %v622_v1 = vpack.c.bf16 %v143_v55, %v139_v53 }
  0x45   :  { %607 = vmatpush1.bf16.msra.mxu0 %v606_v16  ;;  %v137_v61 = vld [vmem:[#allocation2 + $0x270] sm:$0xff]  ;;  %v142_v63 = vld [vmem:[#allocation2 + $0x298] sm:$0xff]  ;;  %293 = vmatprep.mubr.f32.mxu0 %v205_v62  ;;  %v624_v2 = vpack.c.bf16 %v152_v57, %v148_v56  ;;  %v147_v3 = vld [vmem:[#allocation2 + $0x2c0] sm:$0xff] }
  0x46   :  { %609 = vmatprep.subr.bf16.mxu0 %v608_v17  ;;  %v146_v0 = vld [vmem:[#allocation2 + $0x2b8] sm:$0xff]  ;;  %364 = vmatprep.mubr.f32.mxu1 %v205_v62  ;;  %v151_v4 = vld [vmem:[#allocation2 + $0x2e0] sm:$0xff]  ;;  %v156_v5 = vld [vmem:[#allocation2 + $0x308] sm:$0xff]  ;;  %v682_v6 = vpack.c.bf16 %v137_v61, %v133_v60 }
  0x47   :  { %671 = vmatpush1.bf16.msra.mxu1 %v670_v33  ;;  %v160_v7 = vld [vmem:[#allocation2 + $0x328] sm:$0xff]  ;;  %v684_v8 = vpack.c.bf16 %v146_v0, %v142_v63  ;;  %v141_v9 = vld [vmem:[#allocation2 + $0x290] sm:$0xff]  ;;  %v150_v11 = vld [vmem:[#allocation2 + $0x2d8] sm:$0xff]  ;;  %v626_v13 = vpack.c.bf16 %v151_v4, %v147_v3 }
  0x48   :  { %673 = vmatprep.subr.bf16.mxu1 %v672_v35  ;;  %v145_v10 = vld [vmem:[#allocation2 + $0x2b0] sm:$0xff]  ;;  %v154_v12 = vld [vmem:[#allocation2 + $0x2f8] sm:$0xff]  ;;  %v628_v14 = vpack.c.bf16 %v160_v7, %v156_v5  ;;  %v155_v15 = vld [vmem:[#allocation2 + $0x300] sm:$0xff]  ;;  %v888_v5 = vmov 0.0|0.0  }
  0x49   :  { %611 = vmatpush1.bf16.msra.mxu0 %v610_v28  ;;  %v159_v16 = vld [vmem:[#allocation2 + $0x320] sm:$0xff]  ;;  %v164_v17 = vld [vmem:[#allocation2 + $0x348] sm:$0xff]  ;;  %v686_v18 = vpack.c.bf16 %v145_v10, %v141_v9  ;;  %v688_v20 = vpack.c.bf16 %v154_v12, %v150_v11  ;;  %v149_v21 = vld [vmem:[#allocation2 + $0x2d0] sm:$0xff] }
  0x4a   :  { %613 = vmatprep.subr.bf16.mxu0 %v612_v29  ;;  %v168_v19 = vld [vmem:[#allocation2 + $0x368] sm:$0xff]  ;;  %v153_v22 = vld [vmem:[#allocation2 + $0x2f0] sm:$0xff]  ;;  %v158_v23 = vld [vmem:[#allocation2 + $0x318] sm:$0xff]  ;;  %v630_v25 = vpack.c.bf16 %v159_v16, %v155_v15 }
  0x4b   :  { %675 = vmatpush1.bf16.msra.mxu1 %v674_v45  ;;  %v162_v24 = vld [vmem:[#allocation2 + $0x338] sm:$0xff]  ;;  %v632_v26 = vpack.c.bf16 %v168_v19, %v164_v17  ;;  %v163_v27 = vld [vmem:[#allocation2 + $0x340] sm:$0xff]  ;;  %v172_v29 = vld [vmem:[#allocation2 + $0x388] sm:$0xff]  ;;  %v690_v30 = vpack.c.bf16 %v153_v22, %v149_v21 }
  0x4c   :  { %677 = vmatprep.subr.bf16.mxu1 %v676_v47  ;;  %v167_v28 = vld [vmem:[#allocation2 + $0x360] sm:$0xff]  ;;  %v176_v31 = vld [vmem:[#allocation2 + $0x3a8] sm:$0xff]  ;;  %v692_v32 = vpack.c.bf16 %v162_v24, %v158_v23  ;;  %v157_v33 = vld [vmem:[#allocation2 + $0x310] sm:$0xff]  ;;  %v890_v23 = vmov 0.0  }
  0x4d   :  { %615 = vmatpush1.bf16.msra.mxu0 %v614_v40  ;;  %v161_v34 = vld [vmem:[#allocation2 + $0x330] sm:$0xff]  ;;  %v166_v35 = vld [vmem:[#allocation2 + $0x358] sm:$0xff]  ;;  %v634_v37 = vpack.c.bf16 %v167_v28, %v163_v27  ;;  %v636_v38 = vpack.c.bf16 %v176_v31, %v172_v29  ;;  %v171_v39 = vld [vmem:[#allocation2 + $0x380] sm:$0xff]  ;;  %v209_v28 = vlaneseq }
  0x4e   :  { %617 = vmatprep.subr.bf16.mxu0 %v616_v41  ;;  %v170_v36 = vld [vmem:[#allocation2 + $0x378] sm:$0xff]  ;;  %v175_v40 = vld [vmem:[#allocation2 + $0x3a0] sm:$0xff]  ;;  %v180_v41 = vld [vmem:[#allocation2 + $0x3c8] sm:$0xff]  ;;  %v694_v42 = vpack.c.bf16 %v161_v34, %v157_v33 }
  0x4f   :  { %679 = vmatpush1.bf16.msra.mxu1 %v678_v58  ;;  %v184_v43 = vld [vmem:[#allocation2 + $0x3e8] sm:$0xff]  ;;  %v696_v44 = vpack.c.bf16 %v170_v36, %v166_v35  ;;  %v165_v45 = vld [vmem:[#allocation2 + $0x350] sm:$0xff]  ;;  %v174_v47 = vld [vmem:[#allocation2 + $0x398] sm:$0xff]  ;;  %v638_v49 = vpack.c.bf16 %v175_v40, %v171_v39  ;;  %v210_v29 = vshrl.u32 %v209_v28, 7 }
  0x50   :  { %681 = vmatprep.subr.bf16.mxu1 %v680_v59  ;;  %v169_v46 = vld [vmem:[#allocation2 + $0x370] sm:$0xff]  ;;  %v178_v48 = vld [vmem:[#allocation2 + $0x3b8] sm:$0xff]  ;;  %v640_v50 = vpack.c.bf16 %v184_v43, %v180_v41  ;;  %v179_v51 = vld [vmem:[#allocation2 + $0x3c0] sm:$0xff] }
  0x51   :  { %619 = vmatpush1.bf16.msra.mxu0 %v618_v52  ;;  %v183_v52 = vld [vmem:[#allocation2 + $0x3e0] sm:$0xff]  ;;  %v698_v53 = vpack.c.bf16 %v169_v46, %v165_v45  ;;  %v173_v55 = vld [vmem:[#allocation2 + $0x390] sm:$0xff]  ;;  %v182_v57 = vld [vmem:[#allocation2 + $0x3d8] sm:$0xff]  ;;  %v223_v35 = vsub.s32 3, %v210_v29  ;;  %v219_v43 = vsub.s32 2, %v210_v29 }
  0x52   :  { %621 = vmatprep.subr.bf16.mxu0 %v620_v54  ;;  %v700_v54 = vpack.c.bf16 %v178_v48, %v174_v47  ;;  %v177_v56 = vld [vmem:[#allocation2 + $0x3b0] sm:$0xff]  ;;  %v186_v58 = vld [vmem:[#allocation2 + $0x3f8] sm:$0xff]  ;;  %v642_v59 = vpack.c.bf16 %v183_v52, %v179_v51  ;;  %v207_v0 = vld [vmem:[%s1019_s0] sm:$0x1] }
  0x53   :  { %683 = vmatpush1.bf16.msra.mxu1 %v682_v6  ;;  %v702_v60 = vpack.c.bf16 %v177_v56, %v173_v55  ;;  %v704_v61 = vpack.c.bf16 %v186_v58, %v182_v57  ;;  %v181_v62 = vld [vmem:[#allocation2 + $0x3d0] sm:$0xff]  ;;  %v189_v3 = vld [vmem:[#allocation5 + $0x8] sm:$0xff]  ;;  %v191_v7 = vld [vmem:[#allocation5 + $0x18] sm:$0xff] }
  0x54   :  { %685 = vmatprep.subr.bf16.mxu1 %v684_v8  ;;  %v185_v63 = vld [vmem:[#allocation2 + $0x3f0] sm:$0xff]  ;;  %v192_v9 = vld [vmem:[#allocation5 + $0x20] sm:$0xff]  ;;  %v193_v10 = vld [vmem:[#allocation5 + $0x28] sm:$0xff] }
  0x55   :  { %623 = vmatpush1.bf16.msra.mxu0 %v622_v1  ;;  %v706_v1 = vpack.c.bf16 %v185_v63, %v181_v62  ;;  %v190_v6 = vld [vmem:[#allocation5 + $0x10] sm:$0xff]  ;;  %v715_v11 = vpack.c.bf16 %v193_v10, %v192_v9  ;;  %v196_v15 = vld [vmem:[#allocation5 + $0x40] sm:$0xff]  ;;  %v197_v16 = vld [vmem:[#allocation5 + $0x48] sm:$0xff] }
  0x56   :  { %625 = vmatprep.subr.bf16.mxu0 %v624_v2  ;;  %v188_v2 = vld [vmem:[#allocation5] sm:$0xff]  ;;  %v712_v8 = vpack.c.bf16 %v191_v7, %v190_v6  ;;  %v194_v12 = vld [vmem:[#allocation5 + $0x30] sm:$0xff]  ;;  %v721_v17 = vpack.c.bf16 %v197_v16, %v196_v15  ;;  %v199_v19 = vld [vmem:[#allocation5 + $0x58] sm:$0xff] }
  0x57   :  { %687 = vmatpush1.bf16.msra.mxu1 %v686_v18  ;;  %v709_v4 = vpack.c.bf16 %v189_v3, %v188_v2  ;;  %v198_v18 = vld [vmem:[#allocation5 + $0x50] sm:$0xff]  ;;  %v200_v21 = vld [vmem:[#allocation5 + $0x60] sm:$0xff]  ;;  %v201_v22 = vld [vmem:[#allocation5 + $0x68] sm:$0xff] }
  0x58   :  { %689 = vmatprep.subr.bf16.mxu1 %v688_v20  ;;  %v724_v20 = vpack.c.bf16 %v199_v19, %v198_v18  ;;  %v727_v24 = vpack.c.bf16 %v201_v22, %v200_v21  ;;  %v187_v31 = vld [vmem:[%s1023_s4] sm:$0xf] }
  0x59   :  { %627 = vmatpush1.bf16.msra.mxu0 %v626_v13  ;;  %v195_v13 = vld [vmem:[#allocation5 + $0x38] sm:$0xff]  ;;  %v224_v41 = vrot.slane %v187_v31, %v223_v35  ;;  %v220_v47 = vrot.slane %v187_v31, %v219_v43  ;;  %v206_v56 = vld [vmem:[%s1021_s2] sm:$0x1]  ;;  %s891_s2 = smov [#allocation8]  }
  0x5a   :  { %629 = vmatprep.subr.bf16.mxu0 %v628_v14  ;;  %v718_v14 = vpack.c.bf16 %v195_v13, %v194_v12  ;;  %v204_v2 = vld [vmem:[%s1025_s6] sm:$0x1]  ;;  %s498_s21 = sshll.u32 %s891_s2, 4  ;;  %s499_s21 = int_to_ptr.vmem [resolvable:$true] %s498_s21 }
  0x5b   :  { %691 = vmatpush1.bf16.msra.mxu1 %v690_v30  ;;  %v211_v30 = vsub.s32 0, %v210_v29  ;;  %s808_s22 = scalar_lea.vmem %s499_s21, 16  ;;  %s812_s23 = scalar_lea.vmem %s499_s21, 32 }
  0x5c   :  { %693 = vmatprep.subr.bf16.mxu1 %v692_v32  ;;  %v215_v32 = vsub.s32 1, %v210_v29  ;;  %p809_p2 = scmp.ne.s32.totalorder %s499_s21, %s808_s22  ;;  %p813_p3 = scmp.lt.s32.totalorder %s499_s21, %s499_s21 }
  0x5d   :  { %631 = vmatpush1.bf16.msra.mxu0 %v630_v25  ;;  %v202_v25 = vld [vmem:[#allocation5 + $0x70] sm:$0xff]  ;;  %v212_v33 = vrot.slane %v187_v31, %v211_v30  ;;  %p814_p4 = scmp.lt.s32.totalorder %s812_s23, %s808_s22 }
  0x5e   :  { %633 = vmatprep.subr.bf16.mxu0 %v632_v26  ;;  %v203_v26 = vld [vmem:[#allocation5 + $0x78] sm:$0xff]  ;;  %v216_v34 = vrot.slane %v187_v31, %v215_v32 }
  0x5f   :  { %695 = vmatpush1.bf16.msra.mxu1 %v694_v42  ;;  %v730_v27 = vpack.c.bf16 %v203_v26, %v202_v25  ;;  %p815_p5 = por %p814_p4, %p813_p3 }
  0x60   :  { %697 = vmatprep.subr.bf16.mxu1 %v696_v44 }
  0x61   :  { %635 = vmatpush1.bf16.msra.mxu0 %v634_v37  ;;  %p816_p6 = pnand %p815_p5, %p809_p2 }
  0x62   :  { %637 = vmatprep.subr.bf16.mxu0 %v636_v38 }
  0x63   :  { %699 = vmatpush1.bf16.msra.mxu1 %v698_v53 }
  0x64   :  { %701 = vmatprep.subr.bf16.mxu1 %v700_v54 }
  0x65   :  { %639 = vmatpush1.bf16.msra.mxu0 %v638_v49 }
  0x66   :  { %641 = vmatprep.subr.bf16.mxu0 %v640_v50 }
  0x67   :  { %703 = vmatpush1.bf16.msra.mxu1 %v702_v60 }
  0x68   :  { %705 = vmatprep.subr.bf16.mxu1 %v704_v61 }
  0x69   :  { %643 = vmatpush1.bf16.msra.mxu0 %v642_v59 }
  0x6a   :  { %708 = vmatprep.subr.bf16.mxu0 %v888_v5 }
  0x6b   :  { %707 = vmatpush1.bf16.msra.mxu1 %v706_v1 }
  0x6c   :  { %294 = vmatmul.mubr.f32.vlgmr.msra.gmra.mrb[0].mxu0 %v207_v0 }
  0x6d   :  { %710 = vmatpush3.bf16.msra.mxu0 %v709_v4  ;;  %577 = vmatprep.mubr.msk.f32.mxu0 %vm889_vm0, %v890_v23 }
  0x6e   :  { %365 = vmatmul.mubr.f32.vlgmr.msra.gmra.mrb[0].mxu1 %v207_v0  ;;  %711 = vmatprep.subr.bf16.mxu0 %v888_v5 }
  0x71   :  { %713 = vmatpush3.bf16.msra.mxu0 %v712_v8 }
  0x72   :  { %714 = vmatprep.subr.bf16.mxu0 %v888_v5 }
  0x75   :  { %716 = vmatpush3.bf16.msra.mxu0 %v715_v11 }
  0x76   :  { %717 = vmatprep.subr.bf16.mxu0 %v888_v5 }
  0x79   :  { %719 = vmatpush3.bf16.msra.mxu0 %v718_v14 }
  0x7a   :  { %720 = vmatprep.subr.bf16.mxu0 %v888_v5 }
  0x7d   :  { %722 = vmatpush3.bf16.msra.mxu0 %v721_v17 }
  0x7e   :  { %723 = vmatprep.subr.bf16.mxu0 %v888_v5 }
  0x81   :  { %725 = vmatpush3.bf16.msra.mxu0 %v724_v20 }
  0x82   :  { %726 = vmatprep.subr.bf16.mxu0 %v888_v5 }
  0x85   :  { %728 = vmatpush3.bf16.msra.mxu0 %v727_v24 }
  0x86   :  { %729 = vmatprep.subr.bf16.mxu0 %v888_v5 }
  0x89   :  { %731 = vmatpush3.bf16.msra.mxu0 %v730_v27 }
 0x13f   :  { %v295_v36 = vpop.f32.mrb[0].mxu0 }
 0x140   :  { %v296_v37 = vadd.f32 %v295_v36, %v212_v33  ;;  %v297_v38 = vpop.f32.mrb[1].mxu0 }
 0x141   :  { %v298_v39 = vadd.f32 %v297_v38, %v216_v34  ;;  %v366_v44 = vpop.f32.mrb[0].mxu1 }
 0x142   :  { %v525_v40 = vmul.f32 -1.442695, %v296_v37  ;;  %v368_v45 = vpop.f32.mrb[1].mxu1  ;;  %v367_v49 = vadd.f32 %v366_v44, %v220_v47 }
 0x143   :  { %v526_v42 = vmul.f32 -1.442695, %v298_v39  ;;  %v369_v46 = vadd.f32 %v368_v45, %v224_v41 }
 0x144   :  { %744 = vpow2.f32 %v525_v40 }
 0x145   :  { %746 = vpow2.f32 %v526_v42  ;;  %v527_v48 = vmul.f32 -1.442695, %v369_v46 }
 0x147   :  { %748 = vpow2.f32 %v527_v48 }
 0x148   :  { %750 = vtanh.f32 %v367_v49 }
 0x14e   :  { %v745_v50 = vpop.eup %744 }
 0x14f   :  { %v747_v51 = vpop.eup %746  ;;  %v374_v52 = vadd.f32 1.0, %v745_v50 }
 0x150   :  { %v380_v53 = vadd.f32 1.0, %v747_v51 }
 0x151   :  { %752 = vrcp.f32 %v374_v52  ;;  %v749_v54 = vpop.eup %748 }
 0x152   :  { %754 = vrcp.f32 %v380_v53  ;;  %v751_v55 = vpop.eup %750  ;;  %v387_v58 = vadd.f32 1.0, %v749_v54 }
 0x154   :  { %756 = vrcp.f32 %v387_v58 }
 0x15b   :  { %v753_v57 = vpop.eup %752 }
 0x15c   :  { %v755_v59 = vpop.eup %754  ;;  %v391_v60 = vmul.f32 %v753_v57, %v751_v55 }
 0x15d   :  { %v390_v61 = vmul.f32 %v755_v59, %v206_v56 }
 0x15e   :  { %v757_v63 = vpop.eup %756 }
 0x15f   :  { %v392_v62 = vadd.f32 %v391_v60, %v390_v61 }
 0x161   :  { %758 = vtanh.f32 %v392_v62  ;;  %481 = vst [vmem:[#allocation10] sm:$0x1] %v392_v62 }
 0x16b   :  { %v759_v0 = vpop.eup %758 }
 0x16c   :  { %v394_v1 = vmul.f32 %v759_v0, %v757_v63 }
 0x16e   :  { %578 = vmatmul.mubr.f32.vlgmr.msra.gmra.mrb[2].mxu0 %v394_v1  ;;  %480 = vst [vmem:[#allocation8] sm:$0x1] %v394_v1 }
 0x241   :  { %v461_v3 = vpop.f32.mrb[2].mxu0 }
 0x242   :  { %v462_v4 = vadd.f32 %v461_v3, %v204_v2  ;;  %v579_v5 = vpop.f32.mrb[3].mxu0 }
 0x244   :  { %v466_v6 = vsel %vm465_vm1, %v462_v4, -inf }
 0x245   :  { %467 = vmax.xlane.f32.xlu0 %v466_v6 }
 0x2d2   :  { %v468_v7 = vpop.xlane.xlu0 %467 }
 0x2d3   :  { %v469_v8 = vsub.f32 %v462_v4, %v468_v7 }
 0x2d5   :  { %v470_v9 = vmul.f32 1.442695, %v469_v8 }
 0x2d7   :  { %760 = vpow2.f32 %v470_v9 }
 0x2e1   :  { %v761_v10 = vpop.eup %760 }
 0x2e2   :  { %v472_v11 = vsel %vm465_vm1, %v761_v10, 0.0 }
 0x2e3   :  { %473 = vadd.xlane.f32.xlu0 %v472_v11 }
 0x2e4   :  { %819 = shalt.err (!%p816_p6)
}
 0x2e5   :  { %s820_s25 = scalar_lea.hbm %s1027_s8, 16 }
 0x2e6   :  { %p821_p7 = scmp.ne.s32.totalorder %s1027_s8, %s820_s25  ;;  %p824_p8 = scmp.lt.u32.totalorder %s820_s25, %s1027_s8 }
 0x2e8   :  { %p826_p9 = pnand %p824_p8, %p821_p7 }
 0x2ea   :  { %829 = shalt.err (!%p826_p9)
}
 0x2eb   :  { %501 = dma.vmem_to_hbm [thread:$0]  %s499_s21, 16, %s1027_s8, [#allocation9]  }
 0x2ec   :  { %s892_s12 = smov [#allocation10]  }
 0x2ed   :  { %s508_s3 = sshll.u32 %s892_s12, 4  ;;  %s509_s3 = int_to_ptr.vmem [resolvable:$true] %s508_s3 }
 0x2ee   :  { %s830_s10 = scalar_lea.vmem %s509_s3, 16  ;;  %s834_s13 = scalar_lea.vmem %s509_s3, 32 }
 0x2ef   :  { %p831_p10 = scmp.ne.s32.totalorder %s509_s3, %s830_s10  ;;  %p835_p11 = scmp.lt.s32.totalorder %s509_s3, %s509_s3 }
 0x2f0   :  { %p836_p12 = scmp.lt.s32.totalorder %s834_s13, %s830_s10 }
 0x2f2   :  { %p837_p13 = por %p836_p12, %p835_p11 }
 0x2f4   :  { %p838_p0 = pnand %p837_p13, %p831_p10 }
 0x2f6   :  { %841 = shalt.err (!%p838_p0)
}
 0x2f7   :  { %s842_s15 = scalar_lea.hbm %s1028_s9, 16 }
 0x2f8   :  { %p843_p1 = scmp.ne.s32.totalorder %s1028_s9, %s842_s15  ;;  %p846_p2 = scmp.lt.u32.totalorder %s842_s15, %s1028_s9 }
 0x2fa   :  { %p848_p3 = pnand %p846_p2, %p843_p1 }
 0x2fc   :  { %851 = shalt.err (!%p848_p3)
}
 0x2fd   :  { %511 = dma.vmem_to_hbm [thread:$0]  %s509_s3, 16, %s1028_s9, [#allocation9]  }
 0x2fe   :  { %s893_s18 = smov [#allocation7]  }
 0x2ff   :  { %s488_s19 = sshll.u32 %s893_s18, 4  ;;  %s489_s19 = int_to_ptr.vmem [resolvable:$true] %s488_s19 }
 0x300   :  { %s852_s20 = scalar_lea.vmem %s489_s19, 16  ;;  %s856_s2 = scalar_lea.vmem %s489_s19, 32 }
 0x301   :  { %p853_p4 = scmp.ne.s32.totalorder %s489_s19, %s852_s20  ;;  %p857_p5 = scmp.lt.s32.totalorder %s489_s19, %s489_s19 }
 0x302   :  { %p858_p6 = scmp.lt.s32.totalorder %s856_s2, %s852_s20 }
 0x304   :  { %p859_p7 = por %p858_p6, %p857_p5 }
 0x306   :  { %p860_p8 = pnand %p859_p7, %p853_p4 }
 0x370   :  { %v474_v12 = vpop.xlane.xlu0 %473 }
 0x371   :  { %762 = vlog2.f32 %v474_v12 }
 0x37b   :  { %v763_v13 = vpop.eup %762 }
 0x37c   :  { %v476_v14 = vmul.f32 0.6931472, %v763_v13 }
 0x37e   :  { %v477_v15 = vadd.f32 %v476_v14, %v468_v7 }
 0x380   :  { %v478_v16 = vsub.f32 %v462_v4, %v477_v15 }
 0x382   :  { %479 = vst [vmem:[#allocation7] sm:$0x1] %v478_v16 }
 0x383   :  { %863 = shalt.err (!%p860_p8)
}
 0x384   :  { %s864_s22 = scalar_lea.hbm %s1026_s7, 16 }
 0x385   :  { %p865_p9 = scmp.ne.s32.totalorder %s1026_s7, %s864_s22  ;;  %p868_p10 = scmp.lt.u32.totalorder %s864_s22, %s1026_s7 }
 0x387   :  { %p870_p11 = pnand %p868_p10, %p865_p9 }
 0x389   :  { %873 = shalt.err (!%p870_p11)
}
 0x38a   :  { %491 = dma.vmem_to_hbm [thread:$0]  %s489_s19, 16, %s1026_s7, [#allocation4]  }
 0x38b   :  { %878 = dma.done.wait [#allocation4], 16  }
 0x38c   :  { %879 = vsyncadd [#allocation4], 4294967280 }
 0x38d   :  { %880 = dma.done.wait [#allocation9], 32  }
 0x38e   :  { %881 = vsyncadd [#allocation9], 4294967264 }
 0x38f   :  { %521 = vsyncpa [#allocation3], 1 }
 0x390   :  { %522 = vsyncpa [#allocation6], 1 }
 0x391   :  { %523 = vsyncpa [#allocation4], 1 }
 0x392   :  { %524 = vsyncpa [#allocation9], 1 }

</bundles_post_ra>
